<compile_context>
chip_gen: v7x
topology: tpu7x:2x2x1
jax: 0.10.0
libtpu: 0.0.40
codegen_flags: <defaults>
</compile_context>

<pallas_src>
import functools

import numpy as np
import jax
import jax.numpy as jnp
from jax.experimental import pallas as pl
from jax.experimental.pallas import tpu as pltpu

_MiB = 1024 * 1024


def _round_up(x, m):
    return (x + m - 1) // m * m


def _vmem_capacity_bytes():
    try:
        return int(pltpu.get_tpu_info().vmem_capacity_bytes)
    except Exception:                      # conservative fallback
        return 64 * _MiB


def _vmem_budget():
    """(per-tile VMEM budget, vmem_limit_bytes) scaled to this generation."""
    cap = _vmem_capacity_bytes()
    if cap >= 96 * _MiB:                   # v5e / v6e: 128 MiB physical VMEM
        return 44 * _MiB, 96 * _MiB
    return 22 * _MiB, 48 * _MiB            # v7x: 64 MiB per TensorCore


def _pick_tile_h(Ho, Wx, Wo, L, K, n_taps, Cout_pad, KH, budget_bytes):
    """Fewest row blocks (largest tile_h) whose per-tile footprint fits."""
    w_b = n_taps * K * Cout_pad * 2 * 2          # bf16 weights (double-buffered)
    halo_b = max(KH - 1, 1) * Wx * L * 2 * 2     # bf16 halo rows (x2 buffers)
    stat_b = 4 * Cout_pad * 4 * 2                # partial-stat outputs
    fixed = w_b + halo_b + stat_b
    for nb in range(1, Ho + 1):
        th = -(-Ho // nb)                        # ceil(Ho / nb)
        in_b = th * Wx * L * 2 * 2               # bf16 main rows (x2 buffers)
        out_b = th * Wo * Cout_pad * 2 * 2       # bf16 output tile (x2 buffers)
        tmp_b = ((th + KH - 1) * Wx * L * 2      # concatenated rows (value)
                 + th * Wo * Cout_pad * 4        # f32 accumulator
                 + 2 * th * Wo * K * 2)          # lhs slices / relayout copies
        if fixed + in_b + out_b + tmp_b <= budget_bytes:
            return th
    return 1


def _conv_kernel(x_ref, halo_ref, w_ref, o_ref, sum_ref=None, sq_ref=None, *,
                 taps, tile_h, Wo, K, Cout_pad, Ho, with_stats, mask_tail,
                 apply_relu):
    """Direct conv on one (image, output-row-block) tile.

    x_ref    : (1, tile_h, Wx, L)        bf16  main input rows (no halo dup)
    halo_ref : (1, halo_rows, Wx, L)     bf16  next rows needed by the window
    w_ref    : (n_taps, K, Cout_pad)     bf16  resident (constant index_map)
    o_ref    : (1, tile_h, Wo, Cout_pad) bf16  lane-dense (Cout padded to 128)
    sum_ref  : (1, 1, Cout_pad)          f32   per-block partial sum   (bn only)
    sq_ref   : (1, 1, Cout_pad)          f32   per-block partial sumsq (bn only)
    """
    rows = jnp.concatenate([x_ref[0], halo_ref[0]], axis=0)  # (tile_h+halo, Wx, L)

    acc = None
    # Spatial taps unrolled; the MXU contraction dim is K (= KW*Cin when the KW
    # fold is enabled, = Cin otherwise).
    for t, (dh, dw) in enumerate(taps):
        lhs = rows[dh:dh + tile_h, dw:dw + Wo, :].reshape(tile_h * Wo, K)
        part = jnp.dot(lhs, w_ref[t], preferred_element_type=jnp.float32)
        acc = part if acc is None else acc + part

    if with_stats:
        stat = acc
        if mask_tail:
            # Exclude the padded tail output rows (Ho was rounded up to a
            # multiple of tile_h) from the BatchNorm statistics.
            hb = pl.program_id(1)
            valid = Ho - hb * tile_h
            rid = jax.lax.broadcasted_iota(
                jnp.int32, (tile_h * Wo, Cout_pad), 0) // Wo
            stat = jnp.where(rid < valid, acc, 0.0)
        sum_ref[0] = jnp.sum(stat, axis=0, keepdims=True)
        sq_ref[0] = jnp.sum(stat * stat, axis=0, keepdims=True)

    if apply_relu:                      # bn=False: fuse ReLU into the conv
        acc = jnp.maximum(acc, 0.0)
    o_ref[0] = acc.reshape(tile_h, Wo, Cout_pad).astype(o_ref.dtype)


def _conv_bn_relu_impl(x, w_oihw, gamma, beta, *, padding=1, stride=1, bn=True,
                       eps=1e-5, tile_h=None, data_format="NCHW"):
    """Pallas implementation of ConvBnRelu.forward."""
    assert stride == 1  # TODO(synk): general stride needs strided patch extraction.
    assert data_format in ("NCHW", "NHWC")

    if data_format == "NCHW":
        N, Cin, H, W = x.shape
        x_nhwc = jnp.transpose(x, (0, 2, 3, 1))
    else:
        N, H, W, Cin = x.shape
        x_nhwc = x
    Cout, Cin_w, KH, KW = w_oihw.shape
    assert Cin == Cin_w

    Hp, Wp = H + 2 * padding, W + 2 * padding
    Ho, Wo = Hp - KH + 1, Wp - KW + 1
    Cout_pad = _round_up(Cout, 128)              # lane-dense stores everywhere

    # KW lane-fold only while Cin is small: for Cin >= 256 the contraction is
    # already MXU-deep and folding would triple the (memory-bound) input bytes.
    # TODO(synk): gate the threshold per chip (128 on v5e's 128-deep MXU).
    fold_kw = (Cin < 256) and (KW > 1)
    if fold_kw:
        L, K_dim, Wx = KW * Cin, KW * Cin, Wo
        taps = tuple((kh, 0) for kh in range(KH))
    else:
        L, K_dim, Wx = Cin, Cin, Wp
        taps = tuple((kh, kw) for kh in range(KH) for kw in range(KW))
    n_taps = len(taps)

    budget, vmem_limit = _vmem_budget()
    if tile_h is None:
        tile_h = _pick_tile_h(Ho, Wx, Wo, L, K_dim, n_taps, Cout_pad, KH, budget)
    tile_h = min(tile_h, Ho)
    num_hb = -(-Ho // tile_h)                    # non-divisor tile_h allowed
    Ho_pad = num_hb * tile_h
    halo_rows = max(KH - 1, 1)

    # ---------------- wrapper glue (plain JAX layout plumbing) ----------------
    xb = x_nhwc.astype(jnp.bfloat16)
    extra_rows = (Ho_pad - Ho) + (halo_rows - (KH - 1))
    xp = jnp.pad(xb, ((0, 0), (padding, padding + extra_rows),
                      (padding, padding), (0, 0)))
    if fold_kw:
        # Lane-pack the KW taps with Cin -> contraction dim KW*Cin.
        xp = jnp.concatenate([xp[:, :, kw:kw + Wo, :] for kw in range(KW)],
                             axis=-1)            # (N, Ho_pad+halo, Wo, KW*Cin)
    # Tiny halo array: only the (KH-1) extra rows each block needs (the full
    # haloed-block stack of the previous version is gone).
    halo = jnp.stack(
        [xp[:, hb * tile_h + tile_h: hb * tile_h + tile_h + halo_rows]
         for hb in range(num_hb)], axis=1)
    halo = halo.reshape(N * num_hb, halo_rows, Wx, L)

    w = jnp.transpose(w_oihw, (2, 3, 1, 0))      # (KH, KW, Cin, Cout)
    w = jnp.pad(w, ((0, 0), (0, 0), (0, 0), (0, Cout_pad - Cout)))
    if fold_kw:
        w_k = w.reshape(KH, KW * Cin, Cout_pad).astype(jnp.bfloat16)
    else:
        w_k = w.reshape(KH * KW, Cin, Cout_pad).astype(jnp.bfloat16)

    mask_tail = bn and (Ho_pad != Ho)
    kern = functools.partial(
        _conv_kernel, taps=taps, tile_h=tile_h, Wo=Wo, K=K_dim,
        Cout_pad=Cout_pad, Ho=Ho, with_stats=bn, mask_tail=mask_tail,
        apply_relu=not bn)

    conv_out_shape = jax.ShapeDtypeStruct((N, Ho_pad, Wo, Cout_pad), jnp.bfloat16)
    conv_out_spec = pl.BlockSpec((1, tile_h, Wo, Cout_pad),
                                 lambda n, hb: (n, hb, 0, 0))
    stat_shape = jax.ShapeDtypeStruct((N * num_hb, 1, Cout_pad), jnp.float32)
    stat_spec = pl.BlockSpec((1, 1, Cout_pad),
                             lambda n, hb: (n * num_hb + hb, 0, 0))
    if bn:
        out_shape = (conv_out_shape, stat_shape, stat_shape)
        out_specs = [conv_out_spec, stat_spec, stat_spec]
    else:
        out_shape = conv_out_shape
        out_specs = conv_out_spec

    conv_flops = 2 * N * Ho_pad * Wo * n_taps * K_dim * Cout_pad
    conv_bytes = (N * (Ho_pad + halo_rows) * Wx * L * 2
                  + n_taps * K_dim * Cout_pad * 2
                  + N * Ho_pad * Wo * Cout_pad * 2
                  + (4 * N * num_hb * Cout_pad * 4 if bn else 0))

    result = pl.pallas_call(
        kern,
        out_shape=out_shape,
        grid_spec=pltpu.PrefetchScalarGridSpec(
            num_scalar_prefetch=0,
            grid=(N, num_hb),
            in_specs=[
                # Non-overlapping main rows of the packed input.
                pl.BlockSpec((1, tile_h, Wx, L), lambda n, hb: (n, hb, 0, 0)),
                # Per-block halo rows (tiny).
                pl.BlockSpec((1, halo_rows, Wx, L),
                             lambda n, hb: (n * num_hb + hb, 0, 0, 0)),
                # Constant index_map -> weights DMA'd once, stay resident.
                pl.BlockSpec((n_taps, K_dim, Cout_pad), lambda n, hb: (0, 0, 0)),
            ],
            out_specs=out_specs,
        ),
        compiler_params=pltpu.CompilerParams(
            dimension_semantics=("parallel", "parallel"),
            vmem_limit_bytes=vmem_limit),
        cost_estimate=pl.CostEstimate(flops=conv_flops, transcendentals=0,
                                      bytes_accessed=conv_bytes),
    )(xp, halo, w_k)

    if bn:
        conv_out, sum_out, sq_out = result
        s = sum_out[:, 0, :]                          # (N*num_hb, Cout_pad)
        q = sq_out[:, 0, :]
        valid_h = np.minimum(tile_h, Ho - np.arange(num_hb) * tile_h)
        counts = jnp.asarray(np.tile(valid_h * Wo, N).reshape(N * num_hb, 1),
                             dtype=jnp.float32)
        total = float(N * Ho * Wo)
        # Chan-style combination of per-block (mean, M2) -> avoids the
        # catastrophic cancellation of a global E[x^2] - E[x]^2.
        mean_blk = s / counts
        m2_blk = jnp.maximum(q - s * mean_blk, 0.0)
        mean = jnp.sum(s, axis=0) / total
        m2 = (jnp.sum(m2_blk, axis=0)
              + jnp.sum(counts * (mean_blk - mean) ** 2, axis=0))
        var = m2 / total                              # biased (training-mode BN)
        # TODO(synk): nn.BatchNorm2d also updates running_mean/running_var with
        # momentum; those training-mode buffers are not modeled here.
        gamma_pad = jnp.pad(gamma.astype(jnp.float32), (0, Cout_pad - Cout))
        beta_pad = jnp.pad(beta.astype(jnp.float32), (0, Cout_pad - Cout))
        scale = gamma_pad * jax.lax.rsqrt(var + eps)
        bias = beta_pad - mean * scale
        # Fused epilogue: affine BN + ReLU + un-pad (+ transpose below) is one
        # XLA fusion over the bf16 intermediate (no second pallas pass).
        y = jnp.maximum(conv_out.astype(jnp.float32) * scale + bias, 0.0)
    else:
        y = result.astype(jnp.float32)      # ReLU already fused in the kernel

    y = y[:, :Ho, :, :Cout]                 # drop row / channel padding
    if data_format == "NCHW":
        y = jnp.transpose(y, (0, 3, 1, 2))  # back to PyTorch NCHW
    # TODO(synk): expose a bf16 NHWC output for layer chaining inside SegNet.
    return y


conv_bn_relu = jax.jit(
    _conv_bn_relu_impl,
    static_argnames=("padding", "stride", "bn", "eps", "tile_h", "data_format"))


def _reference(x, w, gamma, beta, *, padding, bn, eps=1e-5):
    """Pure-JAX reference mirroring the kernel's bf16 rounding points."""
    xb = x.astype(jnp.bfloat16).astype(jnp.float32)
    wb = w.astype(jnp.bfloat16).astype(jnp.float32)
    y = jax.lax.conv_general_dilated(
        xb, wb, window_strides=(1, 1),
        padding=((padding, padding), (padding, padding)),
        dimension_numbers=("NCHW", "OIHW", "NCHW"),
        precision=jax.lax.Precision.HIGHEST)
    if bn:
        mean = jnp.mean(y, axis=(0, 2, 3), keepdims=True)
        var = jnp.mean((y - mean) ** 2, axis=(0, 2, 3), keepdims=True)
        yb = y.astype(jnp.bfloat16).astype(jnp.float32)   # bf16 intermediate
        out = (gamma.reshape(1, -1, 1, 1) * (yb - mean) / jnp.sqrt(var + eps)
               + beta.reshape(1, -1, 1, 1))
        return jnp.maximum(out, 0.0)
    out = jnp.maximum(y, 0.0)
    return out.astype(jnp.bfloat16).astype(jnp.float32)   # bf16 store in kernel


if __name__ == "__main__":
    # ConvBnRelu(kernel_size=3, in_channels=4, out_channels=8, stride=1,
    #            padding=1, bn=True) applied to x: [2, 4, 16, 16]
    N, Cin, Cout, H, W, K = 2, 4, 8, 16, 16, 3

    key = jax.random.PRNGKey(0)
    kx, kw, kg, kb = jax.random.split(key, 4)
    x = jax.random.normal(kx, (N, Cin, H, W), dtype=jnp.float32)
    w = jax.random.normal(kw, (Cout, Cin, K, K), dtype=jnp.float32) * 0.1
    gamma = 1.0 + 0.1 * jax.random.normal(kg, (Cout,), dtype=jnp.float32)
    beta = 0.1 * jax.random.normal(kb, (Cout,), dtype=jnp.float32)

    y_ref_bn = _reference(x, w, gamma, beta, padding=1, bn=True)
    y_ref_nb = _reference(x, w, gamma, beta, padding=1, bn=False)
    # Tolerances reflect the bf16 conv intermediate (values are O(1), so 5e-2
    # is ~2-3 bf16 ulps); real indexing/BN bugs produce O(1) errors.

    # bn=True path, divisor tile_h.
    y = conv_bn_relu(x, w, gamma, beta, padding=1, stride=1, bn=True, tile_h=8)
    y = jax.block_until_ready(y)
    assert y.shape == (N, Cout, H, W), y.shape
    assert float(jnp.max(jnp.abs(y - y_ref_bn))) < 5e-2

    # bn=True path, non-divisor tile_h (exercises padded-tail stat masking).
    y_nd = conv_bn_relu(x, w, gamma, beta, padding=1, stride=1, bn=True, tile_h=5)
    y_nd = jax.block_until_ready(y_nd)
    assert y_nd.shape == (N, Cout, H, W), y_nd.shape
    assert float(jnp.max(jnp.abs(y_nd - y_ref_bn))) < 5e-2

    # bn=False path (ReLU fused into the conv kernel, single output).
    y2 = conv_bn_relu(x, w, gamma, beta, padding=1, stride=1, bn=False, tile_h=8)
    y2 = jax.block_until_ready(y2)
    assert y2.shape == (N, Cout, H, W), y2.shape
    assert float(jnp.max(jnp.abs(y2 - y_ref_nb))) < 2e-2

    # NHWC fast path (no NCHW<->NHWC transposes; auto tile picker).
    x_nhwc = jnp.transpose(x, (0, 2, 3, 1))
    y3 = conv_bn_relu(x_nhwc, w, gamma, beta, padding=1, stride=1, bn=True,
                      data_format="NHWC")
    y3 = jax.block_until_ready(y3)
    assert y3.shape == (N, H, W, Cout), y3.shape
    assert float(jnp.max(jnp.abs(jnp.transpose(y3, (0, 3, 1, 2)) - y_ref_bn))) < 5e-2

    print("KERNEL_OK")
</pallas_src>

<mosaic_0001>
module attributes {stable_mosaic.version = 11 : i64} {
  func.func @_conv_kernel(%arg0: i32, %arg1: i32, %arg2: memref<1x8x16x12xbf16, #tpu.memory_space<vmem>>, %arg3: memref<1x2x16x12xbf16, #tpu.memory_space<vmem>>, %arg4: memref<3x12x128xbf16, #tpu.memory_space<vmem>>, %arg5: memref<1x8x16x128xbf16, #tpu.memory_space<vmem>>, %arg6: memref<1x1x128xf32, #tpu.memory_space<vmem>>, %arg7: memref<1x1x128xf32, #tpu.memory_space<vmem>>) attributes {dimension_semantics = [#tpu.dimension_semantics<parallel>, #tpu.dimension_semantics<parallel>], iteration_bounds = array<i64: 2, 2>, scalar_prefetch = 0 : i64, scratch_operands = 0 : i64, tpu.core_type = #tpu.core_type<tc>, window_params = [{transform_indices = @transform_0, window_bounds = array<i64: 1, 8, 16, 12>}, {transform_indices = @transform_1, window_bounds = array<i64: 1, 2, 16, 12>}, {pipeline_mode = #tpu.pipeline_mode<synchronous>, transform_indices = @transform_2, window_bounds = array<i64: 3, 12, 128>}, {transform_indices = @transform_3, window_bounds = array<i64: 1, 8, 16, 128>}, {transform_indices = @transform_4, window_bounds = array<i64: 1, 1, 128>}, {transform_indices = @transform_5, window_bounds = array<i64: 1, 1, 128>}]} {
    %c0 = arith.constant 0 : index
    %c0_0 = arith.constant 0 : index
    %c0_1 = arith.constant 0 : index
    %c0_2 = arith.constant 0 : index
    %0 = vector.load %arg2[%c0, %c0_0, %c0_1, %c0_2] : memref<1x8x16x12xbf16, #tpu.memory_space<vmem>>, vector<1x8x16x12xbf16>
    %1 = vector.shape_cast %0 : vector<1x8x16x12xbf16> to vector<8x16x12xbf16>
    %c0_3 = arith.constant 0 : index
    %c0_4 = arith.constant 0 : index
    %c0_5 = arith.constant 0 : index
    %c0_6 = arith.constant 0 : index
    %2 = vector.load %arg3[%c0_3, %c0_4, %c0_5, %c0_6] : memref<1x2x16x12xbf16, #tpu.memory_space<vmem>>, vector<1x2x16x12xbf16>
    %3 = vector.shape_cast %2 : vector<1x2x16x12xbf16> to vector<2x16x12xbf16>
    %4 = tpu.concatenate %1, %3 in 0 : vector<8x16x12xbf16>, vector<2x16x12xbf16> -> vector<10x16x12xbf16>
    %5 = vector.extract_strided_slice %4 {offsets = [0, 0, 0], sizes = [8, 16, 12], strides = [1, 1, 1]} : vector<10x16x12xbf16> to vector<8x16x12xbf16>
    %6 = vector.shape_cast %5 : vector<8x16x12xbf16> to vector<128x12xbf16>
    %c0_7 = arith.constant 0 : index
    %c0_8 = arith.constant 0 : index
    %c0_9 = arith.constant 0 : index
    %7 = vector.load %arg4[%c0_7, %c0_8, %c0_9] : memref<3x12x128xbf16, #tpu.memory_space<vmem>>, vector<1x12x128xbf16>
    %8 = vector.shape_cast %7 : vector<1x12x128xbf16> to vector<12x128xbf16>
    %cst = arith.constant dense<0.000000e+00> : vector<128x128xf32>
    %9 = tpu.matmul %6, %8, %cst {dimension_numbers = #tpu.dot_dimension_numbers<[1], [0], [0], [1], [0, 0, 1, 1], [], []>} : vector<128x12xbf16>, vector<12x128xbf16>, vector<128x128xf32> -> vector<128x128xf32>
    %10 = vector.extract_strided_slice %4 {offsets = [1, 0, 0], sizes = [8, 16, 12], strides = [1, 1, 1]} : vector<10x16x12xbf16> to vector<8x16x12xbf16>
    %11 = vector.shape_cast %10 : vector<8x16x12xbf16> to vector<128x12xbf16>
    %c1 = arith.constant 1 : index
    %c0_10 = arith.constant 0 : index
    %c0_11 = arith.constant 0 : index
    %12 = vector.load %arg4[%c1, %c0_10, %c0_11] : memref<3x12x128xbf16, #tpu.memory_space<vmem>>, vector<1x12x128xbf16>
    %13 = vector.shape_cast %12 : vector<1x12x128xbf16> to vector<12x128xbf16>
    %cst_12 = arith.constant dense<0.000000e+00> : vector<128x128xf32>
    %14 = tpu.matmul %11, %13, %cst_12 {dimension_numbers = #tpu.dot_dimension_numbers<[1], [0], [0], [1], [0, 0, 1, 1], [], []>} : vector<128x12xbf16>, vector<12x128xbf16>, vector<128x128xf32> -> vector<128x128xf32>
    %15 = arith.addf %9, %14 : vector<128x128xf32>
    %16 = vector.extract_strided_slice %4 {offsets = [2, 0, 0], sizes = [8, 16, 12], strides = [1, 1, 1]} : vector<10x16x12xbf16> to vector<8x16x12xbf16>
    %17 = vector.shape_cast %16 : vector<8x16x12xbf16> to vector<128x12xbf16>
    %c2 = arith.constant 2 : index
    %c0_13 = arith.constant 0 : index
    %c0_14 = arith.constant 0 : index
    %18 = vector.load %arg4[%c2, %c0_13, %c0_14] : memref<3x12x128xbf16, #tpu.memory_space<vmem>>, vector<1x12x128xbf16>
    %19 = vector.shape_cast %18 : vector<1x12x128xbf16> to vector<12x128xbf16>
    %cst_15 = arith.constant dense<0.000000e+00> : vector<128x128xf32>
    %20 = tpu.matmul %17, %19, %cst_15 {dimension_numbers = #tpu.dot_dimension_numbers<[1], [0], [0], [1], [0, 0, 1, 1], [], []>} : vector<128x12xbf16>, vector<12x128xbf16>, vector<128x128xf32> -> vector<128x128xf32>
    %21 = arith.addf %15, %20 : vector<128x128xf32>
    %cst_16 = arith.constant dense<0.000000e+00> : vector<128xf32>
    %22 = vector.multi_reduction <add>, %21, %cst_16 [0] : vector<128x128xf32> to vector<128xf32>
    %23 = vector.shape_cast %22 : vector<128xf32> to vector<1x128xf32>
    %c0_17 = arith.constant 0 : index
    %c0_18 = arith.constant 0 : index
    %c0_19 = arith.constant 0 : index
    %24 = vector.load %arg6[%c0_17, %c0_18, %c0_19] : memref<1x1x128xf32, #tpu.memory_space<vmem>>, vector<1x1x128xf32>
    %25 = vector.shape_cast %24 : vector<1x1x128xf32> to vector<1x128xf32>
    %26 = vector.shape_cast %23 : vector<1x128xf32> to vector<1x1x128xf32>
    tpu.vector_store %arg6[%c0_17, %c0_18, %c0_19], %26 {strides = array<i32>} : memref<1x1x128xf32, #tpu.memory_space<vmem>>, vector<1x1x128xf32>,
    %27 = arith.mulf %21, %21 : vector<128x128xf32>
    %cst_20 = arith.constant dense<0.000000e+00> : vector<128xf32>
    %28 = vector.multi_reduction <add>, %27, %cst_20 [0] : vector<128x128xf32> to vector<128xf32>
    %29 = vector.shape_cast %28 : vector<128xf32> to vector<1x128xf32>
    %c0_21 = arith.constant 0 : index
    %c0_22 = arith.constant 0 : index
    %c0_23 = arith.constant 0 : index
    %30 = vector.load %arg7[%c0_21, %c0_22, %c0_23] : memref<1x1x128xf32, #tpu.memory_space<vmem>>, vector<1x1x128xf32>
    %31 = vector.shape_cast %30 : vector<1x1x128xf32> to vector<1x128xf32>
    %32 = vector.shape_cast %29 : vector<1x128xf32> to vector<1x1x128xf32>
    tpu.vector_store %arg7[%c0_21, %c0_22, %c0_23], %32 {strides = array<i32>} : memref<1x1x128xf32, #tpu.memory_space<vmem>>, vector<1x1x128xf32>,
    %33 = vector.shape_cast %21 : vector<128x128xf32> to vector<8x16x128xf32>
    %34 = arith.truncf %33 : vector<8x16x128xf32> to vector<8x16x128xbf16>
    %c0_24 = arith.constant 0 : index
    %c0_25 = arith.constant 0 : index
    %c0_26 = arith.constant 0 : index
    %c0_27 = arith.constant 0 : index
    %35 = vector.load %arg5[%c0_24, %c0_25, %c0_26, %c0_27] : memref<1x8x16x128xbf16, #tpu.memory_space<vmem>>, vector<1x8x16x128xbf16>
    %36 = vector.shape_cast %35 : vector<1x8x16x128xbf16> to vector<8x16x128xbf16>
    %37 = vector.shape_cast %34 : vector<8x16x128xbf16> to vector<1x8x16x128xbf16>
    tpu.vector_store %arg5[%c0_24, %c0_25, %c0_26, %c0_27], %37 {strides = array<i32>} : memref<1x8x16x128xbf16, #tpu.memory_space<vmem>>, vector<1x8x16x128xbf16>,
    return
  }
  func.func @transform_0(%arg0: i32, %arg1: i32) -> (i32, i32, i32, i32) {
    %c0_i32 = arith.constant 0 : i32
    %c0_i32_0 = arith.constant 0 : i32
    %c0_i32_1 = arith.constant 0 : i32
    return %arg0, %arg1, %c0_i32, %c0_i32_0 : i32, i32, i32, i32
  }
  func.func @transform_1(%arg0: i32, %arg1: i32) -> (i32, i32, i32, i32) {
    %c2_i32 = arith.constant 2 : i32
    %0 = arith.muli %arg0, %c2_i32 : i32
    %1 = arith.addi %0, %arg1 : i32
    %c0_i32 = arith.constant 0 : i32
    %c0_i32_0 = arith.constant 0 : i32
    %c0_i32_1 = arith.constant 0 : i32
    %c0_i32_2 = arith.constant 0 : i32
    return %1, %c0_i32, %c0_i32_0, %c0_i32_1 : i32, i32, i32, i32
  }
  func.func @transform_2(%arg0: i32, %arg1: i32) -> (i32, i32, i32) {
    %c0_i32 = arith.constant 0 : i32
    %c0_i32_0 = arith.constant 0 : i32
    %c0_i32_1 = arith.constant 0 : i32
    %c0_i32_2 = arith.constant 0 : i32
    return %c0_i32, %c0_i32_0, %c0_i32_1 : i32, i32, i32
  }
  func.func @transform_3(%arg0: i32, %arg1: i32) -> (i32, i32, i32, i32) {
    %c0_i32 = arith.constant 0 : i32
    %c0_i32_0 = arith.constant 0 : i32
    %c0_i32_1 = arith.constant 0 : i32
    return %arg0, %arg1, %c0_i32, %c0_i32_0 : i32, i32, i32, i32
  }
  func.func @transform_4(%arg0: i32, %arg1: i32) -> (i32, i32, i32) {
    %c2_i32 = arith.constant 2 : i32
    %0 = arith.muli %arg0, %c2_i32 : i32
    %1 = arith.addi %0, %arg1 : i32
    %c0_i32 = arith.constant 0 : i32
    %c0_i32_0 = arith.constant 0 : i32
    %c0_i32_1 = arith.constant 0 : i32
    return %1, %c0_i32, %c0_i32_0 : i32, i32, i32
  }
  func.func @transform_5(%arg0: i32, %arg1: i32) -> (i32, i32, i32) {
    %c2_i32 = arith.constant 2 : i32
    %0 = arith.muli %arg0, %c2_i32 : i32
    %1 = arith.addi %0, %arg1 : i32
    %c0_i32 = arith.constant 0 : i32
    %c0_i32_0 = arith.constant 0 : i32
    %c0_i32_1 = arith.constant 0 : i32
    return %1, %c0_i32, %c0_i32_0 : i32, i32, i32
  }
}

</mosaic_0001>

<bundles_post_ra>
// kernel: _conv_bn_relu_impl.1
= control target key start
LH: loop header
LB: loop body
LE: loop exit
PB: predicated region body
PF: predicated region fallthrough
CT: control target
= control target key end

     0   :  { %s1509_s18 = smov 0   ;;  %s1511_s19 = smov 0   ;;  %s1643_s0 = inlined_call_operand.vmem [shape: bf16[2,18,16,12], index: 0, kind: input, shape index: {}]   ;;  %s1644_s1 = inlined_call_operand.vmem [shape: bf16[4,2,16,12], index: 1, kind: input, shape index: {}]   ;;  %s1645_s2 = inlined_call_operand.vmem [shape: bf16[3,12,128], index: 2, kind: input, shape index: {}]   ;;  %s1646_s3 = inlined_call_operand.vmem [shape: bf16[2,16,16,128], index: 3, kind: output, shape index: {0}]   ;;  %s1647_s4 = inlined_call_operand.vmem [shape: f32[4,1,128], index: 4, kind: output, shape index: {1}]   ;;  %s1648_s5 = inlined_call_operand.vmem [shape: f32[4,1,128], index: 5, kind: output, shape index: {2}]  }
   0x1   :  { %s1513_s20 = smov 0   ;;  %s1515_s21 = smov 0  }
   0x2   :  { %s1517_s22 = smov 0  }
   0x3 LB: > { %s25_s23 = sadd.s32 1, %s1469_s20  ;;  %s28_s24 = sadd.s32 1, %s1473_s21  ;;  %s1477_s22 = sphi %s1517_s22, %s16_s22   ;;  %s1473_s21 = sphi %s1515_s21, %s1652_s21   ;;  %s1469_s20 = sphi %s1513_s20, %s1651_s20   ;;  %s1465_s19 = sphi %s1511_s19, %s1650_s19   ;;  %s1461_s18 = sphi %s1509_s18, %s1649_s18  }
   0x4   : > { %p26_p0 = scmp.ge.s32.totalorder %s25_s23, 2  ;;  %p1130_p1 = scmp.ge.s32.totalorder %s1477_s22, 1 }
   0x5   : > { %p250_p2 = scmp.lt.s32.totalorder %s1477_s22, 5 }
   0x6   : > { %s1654_s23 = smov (%p26_p0, %s25_s23), 0  ;;  %s1656_s24 = smov (!%p26_p0, %s28_s24), %s1473_s21 }
   0x7   : > { %p251_p3 = pnand %p1130_p1, %p250_p2  ;;  %p30_p4 = scmp.ge.s32.totalorder %s1656_s24, 2 }
   0x8   : > { %v1426_v0 = vld [vmem:[%s1645_s2 + $0x8] sm:$0x3f] (!%p251_p3)   ;;  %vm461_vm0 = vcmask (!%p251_p3), 1045504   ;;  %s1547_s27 = sshll.u32 (!%p251_p3), %s1461_s18, 3  ;;  %v1427_v1 = vld [vmem:[%s1645_s2] sm:$0x3f] (!%p251_p3)  }
   0x9   : > { %s1658_s24 = smov (%p30_p4, %s1656_s24), 0  ;;  %254 = sbr.rel (%p251_p3) target bundleno = 303 (0x12f), region = 32 }
   0xa   : > { %1381 = vmatprep.subr.msk.bf16.mxu1 (!%p251_p3), %vm461_vm0, %v1426_v0  ;;  %v463_v2 = vsel (!%p251_p3), %vm461_vm0, %v1426_v0, 0  ;;  %p316_p5 = scmp.lt.s32.totalorder (!%p251_p3), %s1465_s19, 1  ;;  %p318_p6 = scmp.lt.s32.totalorder (!%p251_p3), %s1547_s27, 17  ;;  %v1430_v3 = vld [vmem:[%s1645_s2 + $0x10] sm:$0x3f] (!%p251_p3)   ;;  %1382 = vmatprep.subr.msk.bf16.mxu0 (!%p251_p3), %vm461_vm0, %v1427_v1  ;;  %v576_v4 = vsel (!%p251_p3), %vm461_vm0, %v1427_v1, 0 }
   0xb   : > { %1294 = vmatpush3.bf16.msra.mxu1 (!%p251_p3), %v463_v2  ;;  %1312 = vmatpush3.bf16.msra.mxu0 (!%p251_p3), %v576_v4  ;;  %s1134_s10 = sshll.u32 (!%p251_p3), %s1465_s19, 1  ;;  %vm436_vm1 = vcmask (!%p251_p3), 97280   ;;  %v692_v8 = vsel (!%p251_p3), %vm461_vm0, %v1430_v3, 0  ;;  %p343_p8 = scmp.lt.s32.totalorder (!%p251_p3), %s1547_s27, 15 }
   0xc   : > { %1383 = vmatprep.subr.msk.bf16.mxu1 (!%p251_p3), %vm461_vm0, %v1427_v1  ;;  %1384 = vmatprep.subr.msk.bf16.mxu0 (!%p251_p3), %vm461_vm0, %v1430_v3  ;;  %s332_s12 = sadd.s32 (!%p251_p3), %s1461_s18, %s1134_s10 }
   0xd   : > { %p333_p7 = scmp.lt.s32.totalorder (!%p251_p3), %s332_s12, 3 }
  0x10   : > { %s1562_s7 = scalar_select %p316_p5, %s1465_s19, 1 }
  0x11   : > { %s319_s8 = scalar_select %p318_p6, %s1547_s27, 17 }
  0x12   : > { %s1385_s9 = smul.u32 36, %s1562_s7  ;;  %s1660_s12 = smov (!%p333_p7, %s332_s12), 3 }
  0x13   : > { %s1132_s11 = sshll.u32 %s319_s8, 1  ;;  %s1202_s18 = sshll.u32 %s1660_s12, 4 }
  0x14   : > { %s322_s13 = sadd.s32 %s1385_s9, %s1132_s11  ;;  %s337_s26 = scalar_lea.vmem %s1644_s1, %s1202_s18 }
  0x15   : > { %s1133_s14 = sshll.u32 %s322_s13, 2  ;;  %v1437_v14 = vld [vmem:[%s337_s26] sm:$0xff]   ;;  %v1438_v15 = vld [vmem:[%s337_s26 + $0x8] sm:$0xff]   ;;  %s1662_s27 = smov (!%p343_p8, %s1547_s27), 15 }
  0x16   : > { %s324_s17 = scalar_lea.vmem %s1643_s0, %s1133_s14  ;;  %s1138_s28 = sshll.u32 %s1662_s27, 1 }
  0x17   : > { %v1428_v5 = vld [vmem:[%s324_s17 + $0x8] sm:$0xff]   ;;  %v1429_v6 = vld [vmem:[%s324_s17] sm:$0xff]   ;;  %v1431_v7 = vld [vmem:[%s324_s17 + $0x10] sm:$0xff]   ;;  %s1139_s29 = sshll.u32 %s1562_s7, 5  ;;  %s355_s11 = scalar_lea.vmem %s1647_s4, %s1660_s12 }
  0x18   : > { %1295 = vmatprep.mubr.msk.bf16.mxu1 %vm436_vm1, %v1428_v5  ;;  %1313 = vmatprep.mubr.msk.bf16.mxu0 %vm436_vm1, %v1429_v6  ;;  %v1432_v9 = vld [vmem:[%s324_s17 + $0x18] sm:$0xff]   ;;  %v1433_v10 = vld [vmem:[%s324_s17 + $0x20] sm:$0xff]   ;;  %v1434_v11 = vld [vmem:[%s324_s17 + $0x28] sm:$0xff]   ;;  %s347_s30 = sadd.s32 %s1139_s29, %s1138_s28  ;;  %s362_s15 = scalar_lea.vmem %s1648_s5, %s1660_s12 }
  0x19   : > { %1296 = vmatmul.mubr.msk.bf16.vlgmr.msra.gmra.mrb[0].mxu1 %vm436_vm1, %v1431_v7  ;;  %1314 = vmatmul.mubr.msk.bf16.vlgmr.msra.gmra.mrb[0].mxu0 %vm436_vm1, %v1428_v5  ;;  %v1435_v12 = vld [vmem:[%s324_s17 + $0x30] sm:$0xff]   ;;  %v1436_v13 = vld [vmem:[%s324_s17 + $0x38] sm:$0xff]   ;;  %s1140_s6 = sshll.u32 %s347_s30, 2 }
  0x1a   : > { %1348 = vmatpush3.bf16.msra.mxu1 %v576_v4  ;;  %1330 = vmatpush3.bf16.msra.mxu0 %v692_v8  ;;  %s1610_s10 = scalar_lea.vmem %s1646_s3, %s1140_s6 }
  0x1b   : > { %1299 = vmatprep.mubr.msk.bf16.mxu1 %vm436_vm1, %v1432_v9  ;;  %1317 = vmatprep.mubr.msk.bf16.mxu0 %vm436_vm1, %v1431_v7 }
  0x21   : > { %1300 = vmatmul.mubr.msk.bf16.gmra.mrb[4].mxu1 %vm436_vm1, %v1433_v10  ;;  %1318 = vmatmul.mubr.msk.bf16.gmra.mrb[4].mxu0 %vm436_vm1, %v1432_v9 }
  0x22   : > { %1303 = vmatprep.mubr.msk.bf16.mxu1 %vm436_vm1, %v1434_v11  ;;  %1331 = vmatprep.mubr.msk.bf16.mxu0 %vm436_vm1, %v1431_v7 }
  0x29   : > { %1304 = vmatmul.mubr.msk.bf16.gmra.mrb[8].mxu1 %vm436_vm1, %v1435_v12  ;;  %1332 = vmatmul.mubr.msk.bf16.vlgmr.msra.gmra.mrb[0].mxu0 %vm436_vm1, %v1432_v9 }
  0x2a   : > { %1307 = vmatprep.mubr.msk.bf16.mxu1 %vm436_vm1, %v1436_v13  ;;  %1335 = vmatprep.mubr.msk.bf16.mxu0 %vm436_vm1, %v1433_v10 }
  0x31   : > { %1308 = vmatmul.mubr.msk.bf16.gmra.mrb[12].mxu1 %vm436_vm1, %v1437_v14  ;;  %1336 = vmatmul.mubr.msk.bf16.gmra.mrb[4].mxu0 %vm436_vm1, %v1434_v11 }
  0x32   : > { %1321 = vmatprep.mubr.msk.bf16.mxu1 %vm436_vm1, %v1433_v10  ;;  %1339 = vmatprep.mubr.msk.bf16.mxu0 %vm436_vm1, %v1435_v12 }
  0x39   : > { %1322 = vmatmul.mubr.msk.bf16.vlgmr.msra.gmra.mrb[8].mxu1 %vm436_vm1, %v1434_v11  ;;  %1340 = vmatmul.mubr.msk.bf16.gmra.mrb[8].mxu0 %vm436_vm1, %v1436_v13 }
  0x3a   : > { %1325 = vmatprep.mubr.msk.bf16.mxu1 %vm436_vm1, %v1435_v12  ;;  %1343 = vmatprep.mubr.msk.bf16.mxu0 %vm436_vm1, %v1437_v14 }
  0x41   : > { %1326 = vmatmul.mubr.msk.bf16.gmra.mrb[12].mxu1 %vm436_vm1, %v1436_v13  ;;  %1344 = vmatmul.mubr.msk.bf16.gmra.mrb[12].mxu0 %vm436_vm1, %v1438_v15 }
  0xec   : > { %v1297_v16 = vpop.f32.mrb[0].mxu1 }
  0xed   : > { %v499_v17 = vpop.f32.mrb[1].mxu1 }
  0xee   : > { %v1298_v18 = vpop.f32.mrb[2].mxu1 }
  0xef   : > { %v502_v19 = vpop.f32.mrb[3].mxu1 }
  0xf4   : > { %v1301_v20 = vpop.f32.mrb[4].mxu1 }
  0xf5   : > { %v515_v21 = vpop.f32.mrb[5].mxu1 }
  0xf6   : > { %v1302_v22 = vpop.f32.mrb[6].mxu1 }
  0xf7   : > { %v518_v23 = vpop.f32.mrb[7].mxu1 }
  0xfc   : > { %v1333_v24 = vpop.f32.mrb[0].mxu0 }
  0xfd   : > { %v1349_v25 = vadd.f32 %v1333_v24, %v1297_v16  ;;  %v728_v26 = vpop.f32.mrb[1].mxu0 }
  0xfe   : > { %v1350_v27 = vadd.f32 %v728_v26, %v499_v17  ;;  %v1334_v28 = vpop.f32.mrb[2].mxu0 }
  0xff   : > { %v1351_v29 = vadd.f32 %v1334_v28, %v1298_v18  ;;  %v731_v30 = vpop.f32.mrb[3].mxu0  ;;  %v831_v37 = vmul.f32 %v1349_v25, %v1349_v25 }
 0x100   : > { %v1352_v31 = vadd.f32 %v731_v30, %v502_v19  ;;  %v829_v33 = vmul.f32 %v1350_v27, %v1350_v27 }
 0x101   : > { %v1227_v32 = vpack.c.bf16 %v1351_v29, %v1349_v25  ;;  %v832_v43 = vmul.f32 %v1351_v29, %v1351_v29 }
 0x102   : > { %v807_v34 = vadd.f32 %v1352_v31, %v1350_v27  ;;  %v830_v35 = vmul.f32 %v1352_v31, %v1352_v31  ;;  %v1222_v36 = vpack.c.bf16 %v1352_v31, %v1350_v27 }
 0x103   : > { %1259 = vst [vmem:[%s1610_s10 + $0x8] sm:$0xff] %v1227_v32  }
 0x104   : > { %v808_v38 = vadd.f32 %v1349_v25, %v807_v34  ;;  %v845_v39 = vadd.f32 %v830_v35, %v829_v33  ;;  %1223 = vst [vmem:[%s1610_s10] sm:$0xff] %v1222_v36   ;;  %v1337_v40 = vpop.f32.mrb[4].mxu0 }
 0x105   : > { %v1353_v41 = vadd.f32 %v1337_v40, %v1301_v20  ;;  %v744_v42 = vpop.f32.mrb[5].mxu0 }
 0x106   : > { %v846_v44 = vadd.f32 %v845_v39, %v831_v37  ;;  %v1354_v45 = vadd.f32 %v744_v42, %v515_v21  ;;  %v809_v46 = vadd.f32 %v1351_v29, %v808_v38  ;;  %v1338_v47 = vpop.f32.mrb[6].mxu0 }
 0x107   : > { %v1355_v48 = vadd.f32 %v1338_v47, %v1302_v22  ;;  %v747_v49 = vpop.f32.mrb[7].mxu0  ;;  %v835_v59 = vmul.f32 %v1353_v41, %v1353_v41 }
 0x108   : > { %v810_v50 = vadd.f32 %v1354_v45, %v809_v46  ;;  %v833_v51 = vmul.f32 %v1354_v45, %v1354_v45  ;;  %v847_v52 = vadd.f32 %v846_v44, %v832_v43  ;;  %v1356_v53 = vadd.f32 %v747_v49, %v518_v23 }
 0x109   : > { %v1237_v54 = vpack.c.bf16 %v1355_v48, %v1353_v41  ;;  %v836_v3 = vmul.f32 %v1355_v48, %v1355_v48 }
 0x10a   : > { %v848_v55 = vadd.f32 %v847_v52, %v833_v51  ;;  %v811_v56 = vadd.f32 %v1356_v53, %v810_v50  ;;  %v834_v57 = vmul.f32 %v1356_v53, %v1356_v53  ;;  %v1232_v58 = vpack.c.bf16 %v1356_v53, %v1354_v45 }
 0x10b   : > { %1261 = vst [vmem:[%s1610_s10 + $0x18] sm:$0xff] %v1237_v54  }
 0x10c   : > { %v812_v60 = vadd.f32 %v1353_v41, %v811_v56  ;;  %v849_v61 = vadd.f32 %v848_v55, %v834_v57  ;;  %1260 = vst [vmem:[%s1610_s10 + $0x10] sm:$0xff] %v1232_v58   ;;  %v1323_v62 = vpop.f32.mrb[8].mxu1  ;;  %v1341_v63 = vpop.f32.mrb[8].mxu0 }
 0x10d   : > { %v1357_v0 = vadd.f32 %v1341_v63, %v1323_v62  ;;  %v644_v1 = vpop.f32.mrb[9].mxu1  ;;  %v760_v2 = vpop.f32.mrb[9].mxu0 }
 0x10e   : > { %v850_v4 = vadd.f32 %v849_v61, %v835_v59  ;;  %v1358_v5 = vadd.f32 %v760_v2, %v644_v1  ;;  %v813_v6 = vadd.f32 %v1355_v48, %v812_v60  ;;  %v1324_v7 = vpop.f32.mrb[10].mxu1  ;;  %v1342_v8 = vpop.f32.mrb[10].mxu0 }
 0x10f   : > { %v1359_v9 = vadd.f32 %v1342_v8, %v1324_v7  ;;  %v647_v10 = vpop.f32.mrb[11].mxu1  ;;  %v763_v11 = vpop.f32.mrb[11].mxu0  ;;  %v839_v21 = vmul.f32 %v1357_v0, %v1357_v0 }
 0x110   : > { %v814_v12 = vadd.f32 %v1358_v5, %v813_v6  ;;  %v837_v13 = vmul.f32 %v1358_v5, %v1358_v5  ;;  %v851_v14 = vadd.f32 %v850_v4, %v836_v3  ;;  %v1360_v15 = vadd.f32 %v763_v11, %v647_v10 }
 0x111   : > { %v1247_v16 = vpack.c.bf16 %v1359_v9, %v1357_v0  ;;  %v840_v29 = vmul.f32 %v1359_v9, %v1359_v9 }
 0x112   : > { %v852_v17 = vadd.f32 %v851_v14, %v837_v13  ;;  %v815_v18 = vadd.f32 %v1360_v15, %v814_v12  ;;  %v838_v19 = vmul.f32 %v1360_v15, %v1360_v15  ;;  %v1242_v20 = vpack.c.bf16 %v1360_v15, %v1358_v5 }
 0x113   : > { %1263 = vst [vmem:[%s1610_s10 + $0x28] sm:$0xff] %v1247_v16  }
 0x114   : > { %v816_v22 = vadd.f32 %v1357_v0, %v815_v18  ;;  %v853_v23 = vadd.f32 %v852_v17, %v838_v19  ;;  %1262 = vst [vmem:[%s1610_s10 + $0x20] sm:$0xff] %v1242_v20   ;;  %v1327_v24 = vpop.f32.mrb[12].mxu1  ;;  %v1345_v25 = vpop.f32.mrb[12].mxu0 }
 0x115   : > { %v1361_v26 = vadd.f32 %v1345_v25, %v1327_v24  ;;  %v660_v27 = vpop.f32.mrb[13].mxu1  ;;  %v776_v28 = vpop.f32.mrb[13].mxu0 }
 0x116   : > { %v854_v30 = vadd.f32 %v853_v23, %v839_v21  ;;  %v1362_v31 = vadd.f32 %v776_v28, %v660_v27  ;;  %v817_v32 = vadd.f32 %v1359_v9, %v816_v22  ;;  %v1328_v33 = vpop.f32.mrb[14].mxu1  ;;  %v1346_v34 = vpop.f32.mrb[14].mxu0 }
 0x117   : > { %v1363_v35 = vadd.f32 %v1346_v34, %v1328_v33  ;;  %v663_v36 = vpop.f32.mrb[15].mxu1  ;;  %v779_v37 = vpop.f32.mrb[15].mxu0  ;;  %v843_v47 = vmul.f32 %v1361_v26, %v1361_v26 }
 0x118   : > { %v818_v38 = vadd.f32 %v1362_v31, %v817_v32  ;;  %v841_v39 = vmul.f32 %v1362_v31, %v1362_v31  ;;  %v855_v40 = vadd.f32 %v854_v30, %v840_v29  ;;  %v1364_v41 = vadd.f32 %v779_v37, %v663_v36 }
 0x119   : > { %v1257_v42 = vpack.c.bf16 %v1363_v35, %v1361_v26  ;;  %v844_v50 = vmul.f32 %v1363_v35, %v1363_v35 }
 0x11a   : > { %v856_v43 = vadd.f32 %v855_v40, %v841_v39  ;;  %v819_v44 = vadd.f32 %v1364_v41, %v818_v38  ;;  %v842_v45 = vmul.f32 %v1364_v41, %v1364_v41  ;;  %v1252_v46 = vpack.c.bf16 %v1364_v41, %v1362_v31 }
 0x11b   : > { %1265 = vst [vmem:[%s1610_s10 + $0x38] sm:$0xff] %v1257_v42  }
 0x11c   : > { %v820_v48 = vadd.f32 %v1361_v26, %v819_v44  ;;  %v857_v49 = vadd.f32 %v856_v43, %v842_v45  ;;  %1264 = vst [vmem:[%s1610_s10 + $0x30] sm:$0xff] %v1252_v46  }
 0x11e   : > { %v821_v51 = vadd.f32 %v1363_v35, %v820_v48  ;;  %v858_v52 = vadd.f32 %v857_v49, %v843_v47 }
 0x120   : > { %v822_v53 = vrot.slane %v821_v51, 4  ;;  %v859_v54 = vadd.f32 %v858_v52, %v844_v50 }
 0x122   : > { %v823_v55 = vadd.f32 %v822_v53, %v821_v51  ;;  %v860_v56 = vrot.slane %v859_v54, 4 }
 0x124   : > { %v824_v57 = vrot.slane %v823_v55, 2  ;;  %v861_v58 = vadd.f32 %v860_v56, %v859_v54 }
 0x126   : > { %v825_v59 = vadd.f32 %v824_v57, %v823_v55  ;;  %v862_v60 = vrot.slane %v861_v58, 2 }
 0x128   : > { %v826_v61 = vrot.slane %v825_v59, 1  ;;  %v863_v62 = vadd.f32 %v862_v60, %v861_v58 }
 0x12a   : > { %v827_v63 = vadd.f32 %v826_v61, %v825_v59  ;;  %v864_v0 = vrot.slane %v863_v62, 1 }
 0x12c   : > { %828 = vst [vmem:[%s355_s11] sm:$0x1] %v827_v63  ;;  %v865_v1 = vadd.f32 %v864_v0, %v863_v62 }
 0x12e   : > { %866 = vst [vmem:[%s362_s15] sm:$0x1] %v865_v1 }
 0x12f PF: > { %s16_s22 = sadd.s32 1, %s1477_s22   ;;  %s1649_s18 = smov %s1469_s20 }
 0x130   : > { %p13_p9 = scmp.ge.s32.totalorder %s16_s22, 6   ;;  %s1650_s19 = smov %s1473_s21 }
 0x131   : > { %s1651_s20 = smov %s1654_s23  ;;  %s1652_s21 = smov %s1658_s24 }
 0x132   :  { %15 = sbr.rel (!%p13_p9) target bundleno = 3 (0x3), region = 91 }

</bundles_post_ra>
